<compile_context>
chip_gen: v7x
topology: tpu7x:2x2x1
jax: 0.10.0
libtpu: 0.0.40
codegen_flags: <defaults>
</compile_context>

<pallas_src>
import jax
import jax.numpy as jnp
from jax import lax
from jax.experimental import pallas as pl
from jax.experimental.pallas import tpu as pltpu

_LANE = 128


def _round_up(n, m):
    return ((n + m - 1) // m) * m


def _largest_divisor(dim, candidates, default):
    for c in candidates:
        if dim % c == 0:
            return c
    return default


# ---------------------------------------------------------------------------
# Kernels
# ---------------------------------------------------------------------------

def _head_kernel_single_k(x_ref, w_ref, b_ref, o_ref):
    # x_ref: (tm, Dp), w_ref: (tn, Dp), b_ref: (1, tn), o_ref: (tm, tn)
    # Single K block: no accumulator scratch, no pl.when -- just MXU + bias.
    acc = lax.dot_general(
        x_ref[...], w_ref[...],
        dimension_numbers=(((1,), (1,)), ((), ())),   # contract on shared D axis
        preferred_element_type=jnp.float32,
    )
    o_ref[...] = (acc + b_ref[...]).astype(o_ref.dtype)


def _head_kernel_k_tiled(x_ref, w_ref, b_ref, o_ref, acc_ref):
    # x_ref: (tm, tk), w_ref: (tn, tk), b_ref: (1, tn), o_ref/acc_ref: (tm, tn)
    @pl.when(pl.program_id(2) == 0)
    def _():
        acc_ref[...] = jnp.zeros_like(acc_ref)

    acc_ref[...] += lax.dot_general(
        x_ref[...], w_ref[...],
        dimension_numbers=(((1,), (1,)), ((), ())),
        preferred_element_type=jnp.float32,
    )

    @pl.when(pl.program_id(2) == pl.num_programs(2) - 1)
    def _():
        o_ref[...] = (acc_ref[...] + b_ref[...]).astype(o_ref.dtype)


# ---------------------------------------------------------------------------
# Wrapper
# ---------------------------------------------------------------------------

def classification_head(x, weight, bias, *, compute_dtype=jnp.bfloat16):
    """x: (B, S, D); weight: (O, D); bias: (O,).  Returns (B, O) = x[:,0,:] @ W.T + b.

    compute_dtype: MXU input dtype (default bf16, f32 accumulation + f32 bias).
    Pass None to keep the operands' native dtype.
    """
    B, S, D = x.shape
    O, Dw = weight.shape
    assert Dw == D, (Dw, D)
    out_dtype = x.dtype
    cd = compute_dtype if compute_dtype is not None else x.dtype

    # CLS token: a tiny (B, D) strided slice -- negligible next to the W stream.
    x0 = x[:, 0, :].astype(cd)
    # NOTE: for vocab-sized heads, store `weight` in `cd` (bf16) once at init;
    # a per-call cast would re-stream the full W through HBM.
    w = weight.astype(cd)
    b2d = bias.astype(jnp.float32).reshape(1, O)

    # Lane-align the contraction axis only (zeros contribute nothing).
    D_p = _round_up(D, _LANE)
    if D_p != D:
        # TODO(synk): hoist this column pad to param init for very large heads.
        x0 = jnp.pad(x0, ((0, 0), (0, D_p - D)))
        w = jnp.pad(w, ((0, 0), (0, D_p - D)))

    # Tiles: take the whole B / whole O in one tile whenever it fits so the
    # dominant W stream is read from HBM exactly once per call.  Full-array
    # block dims are legal even when not multiples of (8, 128); a ragged last
    # tile (overhang) is masked by Pallas on the output write.
    tm = B if B <= 512 else 256
    tn = O if O <= 512 else _largest_divisor(O, (512, 256, 128), 512)
    gi, gj = pl.cdiv(B, tm), pl.cdiv(O, tn)

    single_k = D_p <= 2048
    tk = D_p if single_k else _largest_divisor(D_p, (2048, 1024, 512, 256), 128)

    flops = 2 * B * D_p * O
    bytes_accessed = int(
        x0.size * x0.dtype.itemsize + w.size * w.dtype.itemsize
        + b2d.size * 4 + B * O * jnp.dtype(out_dtype).itemsize)
    cost = pl.CostEstimate(flops=flops, transcendentals=0,
                           bytes_accessed=bytes_accessed)

    if single_k:
        # 2-D grid, no reduction axis, no scratch, no pl.when.
        out = pl.pallas_call(
            _head_kernel_single_k,
            out_shape=jax.ShapeDtypeStruct((B, O), out_dtype),
            grid=(gi, gj),
            in_specs=[
                pl.BlockSpec((tm, D_p), lambda i, j: (i, 0)),   # CLS rows
                pl.BlockSpec((tn, D_p), lambda i, j: (j, 0)),   # W (O, D) tile
                pl.BlockSpec((1, tn), lambda i, j: (0, j)),     # bias tile
            ],
            out_specs=pl.BlockSpec((tm, tn), lambda i, j: (i, j)),
            compiler_params=pltpu.CompilerParams(
                dimension_semantics=("parallel", "parallel"),
                vmem_limit_bytes=32 * 1024 * 1024,   # tiles are a few MiB max
            ),
            cost_estimate=cost,
        )(x0, w, b2d)
    else:
        # Large D: K-tiled reduction with a resident f32 accumulator.
        gk = D_p // tk
        out = pl.pallas_call(
            _head_kernel_k_tiled,
            out_shape=jax.ShapeDtypeStruct((B, O), out_dtype),
            grid=(gi, gj, gk),
            in_specs=[
                pl.BlockSpec((tm, tk), lambda i, j, k: (i, k)),
                pl.BlockSpec((tn, tk), lambda i, j, k: (j, k)),
                pl.BlockSpec((1, tn), lambda i, j, k: (0, j)),
            ],
            out_specs=pl.BlockSpec((tm, tn), lambda i, j, k: (i, j)),
            scratch_shapes=[pltpu.VMEM((tm, tn), jnp.float32)],
            compiler_params=pltpu.CompilerParams(
                dimension_semantics=("parallel", "parallel", "arbitrary"),
                vmem_limit_bytes=32 * 1024 * 1024,
            ),
            cost_estimate=cost,
        )(x0, w, b2d)
    return out


# ---------------------------------------------------------------------------
# Self-test
# ---------------------------------------------------------------------------

def _run_case(batch, seq, d_model, output_dim, key, compute_dtype):
    kx, kw, kb = jax.random.split(key, 3)
    x = jax.random.normal(kx, (batch, seq, d_model), dtype=jnp.float32)
    # nn.init.normal_(weight, std=0.02); nn.init.normal_(bias, 0) -> mean 0, std 1
    weight = 0.02 * jax.random.normal(kw, (output_dim, d_model), dtype=jnp.float32)
    bias = jax.random.normal(kb, (output_dim,), dtype=jnp.float32)

    out = jax.block_until_ready(
        classification_head(x, weight, bias, compute_dtype=compute_dtype))
    assert out.shape == (batch, output_dim)
    assert out.dtype == x.dtype

    x0 = x[:, 0, :]
    # Loose check against the full-precision f32 reference (bounds bf16 error).
    ref_f32 = jnp.dot(x0, weight.T, precision=lax.Precision.HIGHEST) + bias
    assert jnp.allclose(out, ref_f32, atol=2e-2, rtol=2e-2), (
        "vs f32 ref:", float(jnp.max(jnp.abs(out - ref_f32))))

    # Tight check against a reference using the same compute dtype / f32 accum.
    if compute_dtype is not None:
        ref_cd = lax.dot_general(
            x0.astype(compute_dtype), weight.astype(compute_dtype),
            dimension_numbers=(((1,), (1,)), ((), ())),
            preferred_element_type=jnp.float32) + bias
        assert jnp.allclose(out, ref_cd, atol=1e-4, rtol=1e-4), (
            "vs compute-dtype ref:", float(jnp.max(jnp.abs(out - ref_cd))))


if __name__ == "__main__":
    key = jax.random.PRNGKey(0)

    # 1) Module defaults: d_model=300 (lane-unaligned -> zero-padded D), bf16 MXU.
    _run_case(batch=2, seq=8, d_model=300, output_dim=2,
              key=jax.random.fold_in(key, 0), compute_dtype=jnp.bfloat16)
    # 2) Lane-aligned d_model, pure-f32 path (compute_dtype=None).
    _run_case(batch=2, seq=8, d_model=256, output_dim=2,
              key=jax.random.fold_in(key, 1), compute_dtype=None)
    # 3) Larger class count -> two tn tiles along the "parallel" j axis.
    _run_case(batch=16, seq=4, d_model=256, output_dim=1024,
              key=jax.random.fold_in(key, 2), compute_dtype=jnp.bfloat16)
    # 4) Large d_model -> K-tiled reduction kernel with f32 VMEM accumulator.
    _run_case(batch=4, seq=2, d_model=4096, output_dim=8,
              key=jax.random.fold_in(key, 3), compute_dtype=jnp.bfloat16)

    print("KERNEL_OK")
</pallas_src>

<mosaic_0001>
module attributes {stable_mosaic.version = 11 : i64} {
  func.func @_head_kernel_single_k(%arg0: i32, %arg1: i32, %arg2: memref<2x384xbf16, #tpu.memory_space<vmem>>, %arg3: memref<2x384xbf16, #tpu.memory_space<vmem>>, %arg4: memref<1x2xf32, #tpu.memory_space<vmem>>, %arg5: memref<2x2xf32, #tpu.memory_space<vmem>>) attributes {dimension_semantics = [#tpu.dimension_semantics<parallel>, #tpu.dimension_semantics<parallel>], iteration_bounds = array<i64: 1, 1>, scalar_prefetch = 0 : i64, scratch_operands = 0 : i64, tpu.core_type = #tpu.core_type<tc>, window_params = [{transform_indices = @transform_0, window_bounds = array<i64: 2, 384>}, {transform_indices = @transform_1, window_bounds = array<i64: 2, 384>}, {transform_indices = @transform_2, window_bounds = array<i64: 1, 2>}, {transform_indices = @transform_3, window_bounds = array<i64: 2, 2>}]} {
    %c0 = arith.constant 0 : index
    %c0_0 = arith.constant 0 : index
    %0 = vector.load %arg2[%c0, %c0_0] : memref<2x384xbf16, #tpu.memory_space<vmem>>, vector<2x384xbf16>
    %c0_1 = arith.constant 0 : index
    %c0_2 = arith.constant 0 : index
    %1 = vector.load %arg3[%c0_1, %c0_2] : memref<2x384xbf16, #tpu.memory_space<vmem>>, vector<2x384xbf16>
    %cst = arith.constant dense<0.000000e+00> : vector<2x2xf32>
    %2 = tpu.matmul %0, %1, %cst {dimension_numbers = #tpu.dot_dimension_numbers<[1], [1], [0], [0], [0, 0, 1, 0], [], []>} : vector<2x384xbf16>, vector<2x384xbf16>, vector<2x2xf32> -> vector<2x2xf32>
    %c0_3 = arith.constant 0 : index
    %c0_4 = arith.constant 0 : index
    %3 = vector.load %arg4[%c0_3, %c0_4] : memref<1x2xf32, #tpu.memory_space<vmem>>, vector<1x2xf32>
    %4 = vector.broadcast %3 : vector<1x2xf32> to vector<2x2xf32>
    %5 = arith.addf %2, %4 : vector<2x2xf32>
    %c0_5 = arith.constant 0 : index
    %c0_6 = arith.constant 0 : index
    %6 = vector.load %arg5[%c0_5, %c0_6] : memref<2x2xf32, #tpu.memory_space<vmem>>, vector<2x2xf32>
    tpu.vector_store %arg5[%c0_5, %c0_6], %5 {strides = array<i32>} : memref<2x2xf32, #tpu.memory_space<vmem>>, vector<2x2xf32>,
    return
  }
  func.func @transform_0(%arg0: i32, %arg1: i32) -> (i32, i32) {
    %c0_i32 = arith.constant 0 : i32
    %c0_i32_0 = arith.constant 0 : i32
    return %arg0, %c0_i32 : i32, i32
  }
  func.func @transform_1(%arg0: i32, %arg1: i32) -> (i32, i32) {
    %c0_i32 = arith.constant 0 : i32
    %c0_i32_0 = arith.constant 0 : i32
    return %arg1, %c0_i32 : i32, i32
  }
  func.func @transform_2(%arg0: i32, %arg1: i32) -> (i32, i32) {
    %c0_i32 = arith.constant 0 : i32
    %c0_i32_0 = arith.constant 0 : i32
    return %c0_i32, %arg1 : i32, i32
  }
  func.func @transform_3(%arg0: i32, %arg1: i32) -> (i32, i32) {
    %c0_i32 = arith.constant 0 : i32
    return %arg0, %arg1 : i32, i32
  }
}

</mosaic_0001>

<bundles_post_ra>
// kernel: tpu_custom_call.1
= control target key start
LH: loop header
LB: loop body
LE: loop exit
PB: predicated region body
PF: predicated region fallthrough
CT: control target
= control target key end

     0   :  { %8 = vsyncpa [#allocation3], 0  ;;  %s309_s0 = inlined_call_operand.hbm [shape: bf16[2,384], index: 0, kind: input, shape index: {}]   ;;  %s310_s1 = inlined_call_operand.vmem [shape: bf16[2,384], index: 1, kind: input, shape index: {}]   ;;  %s311_s2 = inlined_call_operand.vmem [shape: f32[1,2], index: 2, kind: input, shape index: {}]   ;;  %s312_s3 = inlined_call_operand.hbm [shape: f32[2,2], index: 3, kind: output, shape index: {}]  }
   0x1   :  { %9 = vsyncpa [#allocation4], 0  ;;  %s254_s12 = smov [#allocation2]   ;;  %s206_s16 = scalar_lea.hbm %s309_s0, 48 }
   0x2   :  { %s16_s13 = sshll.u32 %s254_s12, 4  ;;  %p207_p0 = scmp.ne.s32.totalorder %s309_s0, %s206_s16  ;;  %s17_s13 = int_to_ptr.vmem [resolvable:$true] %s16_s13 }
   0x3   :  { %p210_p1 = scmp.lt.u32.totalorder %s206_s16, %s309_s0 }
   0x5   :  { %p212_p2 = pnand %p210_p1, %p207_p0 }
   0x7   :  { %215 = shalt.err (!%p212_p2)
}
   0x8   :  { %s216_s21 = scalar_lea.vmem %s17_s13, 48  ;;  %s220_s22 = scalar_lea.vmem %s17_s13, 64 }
   0x9   :  { %p217_p3 = scmp.ne.s32.totalorder %s17_s13, %s216_s21  ;;  %p221_p4 = scmp.lt.s32.totalorder %s17_s13, %s17_s13 }
   0xa   :  { %p222_p5 = scmp.lt.s32.totalorder %s220_s22, %s216_s21 }
   0xc   :  { %p223_p6 = por %p222_p5, %p221_p4 }
   0xe   :  { %p224_p7 = pnand %p223_p6, %p217_p3 }
  0x10   :  { %227 = shalt.err (!%p224_p7)
}
  0x11   :  { %19 = dma.hbm_to_vmem [thread:$0]  %s309_s0, 48, %s17_s13, [#allocation3]  }
  0x12   :  { %250 = dma.done.wait [#allocation3], 48  }
  0x13   :  { %251 = vsyncadd [#allocation3], 4294967248  ;;  %v49_v0 = vlaneseq  ;;  %v255_v1 = vmov 0.0   ;;  %v256_v2 = vmov 1966171168   ;;  %vm257_vm0 = vmmov 0  }
  0x14   :  { %193 = vmatprep.subr.bf16.mxu0 %v255_v1  ;;  %v47_v3 = vunpack.c.l.s4 %v256_v2  ;;  %195 = vmatprep.mubr.msk.bf16.mxu0 %vm257_vm0, %v255_v1  ;;  %v190_v7 = vld.sshfl [vmem:[%s310_s1] sm:$0x13 pattern:$0x75316420]  ;;  %s258_s1 = smov [#allocation5]   ;;  %vm171_vm1 = vcmask 9216  }
  0x15   :  { %v50_v4 = vshrl.u32 %v49_v0, 7  ;;  %v72_v8 = vcombine.high %v190_v7, %v190_v7  ;;  %v189_v10 = vld.sshfl [vmem:[#allocation2] sm:$0x13 pattern:$0x75316420]  ;;  %s179_s28 = sshll.u32 %s258_s1, 4  ;;  %s180_s28 = int_to_ptr.vmem [resolvable:$true] %s179_s28 }
  0x16   :  { %v48_v5 = vunpack.c.0.s8 %v47_v3  ;;  %v45_v11 = vcombine.high %v189_v10, %v189_v10  ;;  %v188_v17 = vld [vmem:[%s311_s2] ss:$0 sm:$0xff]  ;;  %s228_s29 = scalar_lea.vmem %s180_s28, 32  ;;  %p233_p9 = scmp.lt.s32.totalorder %s180_s28, %s180_s28 }
  0x17   :  { %p229_p8 = scmp.ne.s32.totalorder %s180_s28, %s228_s29  ;;  %p234_p10 = scmp.lt.s32.totalorder %s228_s29, %s228_s29 }
  0x18   :  { %v51_v6 = vsub.s32 %v48_v5, %v50_v4 }
  0x19   :  { %p235_p11 = por %p234_p10, %p233_p9 }
  0x1a   :  { %v79_v9 = vrot.slane %v190_v7, %v51_v6  ;;  %v86_v12 = vrot.slane %v72_v8, %v51_v6  ;;  %v52_v14 = vrot.slane %v189_v10, %v51_v6  ;;  %v59_v15 = vrot.slane %v45_v11, %v51_v6 }
  0x1b   :  { %p236_p12 = pnand %p235_p11, %p229_p8 }
  0x1c   :  { %v87_v13 = vcombine.high %v79_v9, %v79_v9  ;;  %91 = vmatprep.subr.bf16.mxu1 %v86_v12  ;;  %123 = vmatprep.mubr.bf16.mxu1 %v59_v15  ;;  %v60_v16 = vcombine.high %v52_v14, %v52_v14 }
  0x1d   :  { %92 = vmatpush1.bf16.xpose.msra.mxu1 %v79_v9 }
  0x1e   :  { %194 = vmatpush3.bf16.xpose.msra.mxu0 %v87_v13 }
  0x24   :  { %124 = vmatmul.mubr.bf16.vlgmr.msra.gmra.mrb[0].mxu1 %v52_v14 }
  0x25   :  { %196 = vmatmul.mubr.bf16.vlgmr.msra.gmra.mrb[0].mxu0 %v60_v16 }
  0xf7   :  { %v125_v19 = vpop.f32.mrb[0].mxu1 }
  0xf8   :  { %v165_v18 = vpop.f32.mrb[0].mxu0  ;;  %v126_v21 = vadd.f32 %v188_v17, %v125_v19  ;;  %v127_v22 = vpop.f32.mrb[1].mxu1 }
  0xf9   :  { %v197_v20 = vpop.f32.mrb[1].mxu0  ;;  %v128_v24 = vpop.f32.mrb[2].mxu1 }
  0xfa   :  { %v168_v23 = vpop.f32.mrb[2].mxu0  ;;  %v166_v26 = vadd.f32 %v165_v18, %v126_v21  ;;  %v129_v27 = vpop.f32.mrb[3].mxu1 }
  0xfb   :  { %v198_v25 = vpop.f32.mrb[3].mxu0 }
  0xfc   :  { %172 = vst.msk [vmem:[#allocation5] sm:$0x3] %vm171_vm1, %v166_v26 }
  0xfd   :  { %239 = shalt.err (!%p236_p12)
}
  0xfe   :  { %s240_s4 = scalar_lea.hbm %s312_s3, 32 }
  0xff   :  { %p241_p13 = scmp.ne.s32.totalorder %s312_s3, %s240_s4  ;;  %p244_p0 = scmp.lt.u32.totalorder %s240_s4, %s312_s3 }
 0x101   :  { %p246_p1 = pnand %p244_p0, %p241_p13 }
 0x103   :  { %249 = shalt.err (!%p246_p1)
}
 0x104   :  { %182 = dma.vmem_to_hbm [thread:$0]  %s180_s28, 32, %s312_s3, [#allocation4]  }
 0x105   :  { %252 = dma.done.wait [#allocation4], 32  }
 0x106   :  { %253 = vsyncadd [#allocation4], 4294967264 }
 0x107   :  { %186 = vsyncpa [#allocation3], 1 }
 0x108   :  { %187 = vsyncpa [#allocation4], 1 }

</bundles_post_ra>
